<compile_context>
chip_gen: v5e
topology: v5e:2x2
jax: 0.10.0
libtpu: 0.0.40
codegen_flags: <defaults>
</compile_context>

<pallas_src>
import math
import jax
import jax.numpy as jnp
from jax.experimental import pallas as pl
from jax.experimental.pallas import tpu as pltpu

BN_EPS = 1e-5


# ---------------------------------------------------------------------------
# Kernels
# ---------------------------------------------------------------------------

def _kernel_resident(x_ref, w_ref, b_ref, o_ref):
    """Whole folded weight resident in VMEM: o = relu(x @ W + b), f32 accumulate."""
    y = jnp.dot(x_ref[...], w_ref[...], preferred_element_type=jnp.float32)
    y = y + b_ref[...]                                   # (tb, N) + (1, N)
    o_ref[...] = jnp.maximum(y, 0.0).astype(o_ref.dtype)


def _kernel_ktiled(x_ref, w_ref, b_ref, o_ref, acc_ref):
    """K-tiled matmul with f32 VMEM accumulator; bias + ReLU epilogue on last K step."""
    k = pl.program_id(2)

    @pl.when(k == 0)
    def _():
        acc_ref[...] = jnp.zeros_like(acc_ref)

    acc_ref[...] += jnp.dot(x_ref[...], w_ref[...],
                            preferred_element_type=jnp.float32)

    @pl.when(k == pl.num_programs(2) - 1)
    def _():
        y = acc_ref[...] + b_ref[...]                    # (tb, tn) + (1, tn)
        o_ref[...] = jnp.maximum(y, 0.0).astype(o_ref.dtype)


# ---------------------------------------------------------------------------
# Wrapper: BN fold, tile selection, pallas_call
# ---------------------------------------------------------------------------

def _round_up(x, m):
    return ((x + m - 1) // m) * m


def _vmem_budget_and_limit():
    """(per-step tile budget, vmem_limit_bytes) — generation aware."""
    cap = None
    try:
        cap = int(pltpu.get_tpu_info().vmem_capacity_bytes)
    except Exception:
        try:
            kind = jax.devices()[0].device_kind.lower()
            cap = (64 << 20) if "v7" in kind else (128 << 20)
        except Exception:
            cap = 64 << 20                       # conservative (v7x per-TC VMEM)
    if cap >= (96 << 20):                        # v5e / v6e: 128 MiB physical VMEM
        return 48 << 20, 64 << 20
    return 24 << 20, 30 << 20                    # v7x: 64 MiB physical per TC


def _choose_config(B, K, N, compute_dtype, out_dtype, budget, prefer_resident=True):
    in_b = jnp.dtype(compute_dtype).itemsize
    out_b = jnp.dtype(out_dtype).itemsize
    K_pad = _round_up(K, 128)
    N_pad = _round_up(N, 128)

    if B >= 128:
        b_cap = _round_up(B, 128)
        tb_cands = [c for c in (512, 256, 128) if c <= b_cap] or [128]
    else:
        # Small batch: one sublane-packed tile (multiple of 16 for bf16 packing).
        tb_cands = [_round_up(max(B, 1), 16)]

    # Path A: whole folded weight + bias VMEM-resident, tile only over batch.
    if prefer_resident:
        for tb in tb_cands:
            w_bytes = K_pad * N_pad * in_b + N_pad * 4
            x_bytes = tb * K_pad * in_b
            o_bytes = tb * N_pad * out_b
            # 2x everything: conservative double-buffering estimate.
            if 2 * (w_bytes + x_bytes + o_bytes) <= budget:
                return {"path": "resident", "tb": tb, "K_pad": K_pad, "N_pad": N_pad}

    # Path B: (B_tiles, N_tiles, K_tiles) grid with f32 accumulator scratch.
    tn_cands = [c for c in (1024, 512, 256, 128) if N_pad % c == 0]
    tk_cands = [c for c in (1024, 512, 256, 128) if K_pad % c == 0]
    for tb in tb_cands:                 # grow tb first (MXU M-dim utilization)
        for tn in tn_cands:
            for tk in tk_cands:
                x_t = tb * tk * in_b
                w_t = tk * tn * in_b
                bias_t = tn * 4
                o_t = tb * tn * out_b
                acc = tb * tn * 4
                if 2 * (x_t + w_t + bias_t + o_t) + acc <= budget:
                    return {"path": "ktiled", "tb": tb, "tn": tn, "tk": tk,
                            "K_pad": K_pad, "N_pad": N_pad}
    # Guaranteed-fit fallback: minimum lane-dense tiles (always well under budget).
    return {"path": "ktiled", "tb": tb_cands[-1], "tn": 128, "tk": 128,
            "K_pad": K_pad, "N_pad": N_pad}


def fold_bn_linear(w, b, gamma, beta, running_mean, running_var, *,
                   eps=BN_EPS, compute_dtype=jnp.bfloat16):
    """Fold eval-mode BatchNorm1d + Linear bias into (W_f, b_f).

    w: (N, K) PyTorch nn.Linear layout.  Returns W_f (K, N) in compute_dtype and
    b_f (N,) f32.  Call once per set of weights (inference) and reuse.
    """
    scale = gamma.astype(jnp.float32) * jax.lax.rsqrt(running_var.astype(jnp.float32) + eps)
    w_f = (w.astype(jnp.float32).T * scale[None, :]).astype(compute_dtype)     # (K, N)
    b_f = (b.astype(jnp.float32) - running_mean.astype(jnp.float32)) * scale \
        + beta.astype(jnp.float32)                                             # (N,)
    return w_f, b_f


def block_apply(x, w_f, b_f, *, out_dtype=jnp.float32, prefer_resident=True):
    """Eval-mode Block forward given pre-folded (W_f, b_f).  x: (B, K) -> (B, N)."""
    B, K = x.shape
    Kw, N = w_f.shape
    assert Kw == K, "folded weight must be (in_features, bottleneck_dim)"
    compute_dtype = w_f.dtype

    budget, vmem_limit = _vmem_budget_and_limit()
    cfg = _choose_config(B, K, N, compute_dtype, out_dtype, budget, prefer_resident)
    tb, K_pad, N_pad = cfg["tb"], cfg["K_pad"], cfg["N_pad"]
    B_pad = _round_up(B, tb)

    # Pad to tile multiples (zero rows/cols are harmless: matmul of zeros, then sliced off).
    xp = x.astype(compute_dtype)
    if (B_pad, K_pad) != (B, K):
        xp = jnp.pad(xp, ((0, B_pad - B), (0, K_pad - K)))
    wp = w_f
    if (K_pad, N_pad) != (K, N):
        wp = jnp.pad(wp, ((0, K_pad - K), (0, N_pad - N)))
    bp = b_f.astype(jnp.float32)
    if N_pad != N:
        bp = jnp.pad(bp, (0, N_pad - N))
    bias2d = bp.reshape(1, N_pad)

    if cfg["path"] == "resident":
        out = pl.pallas_call(
            _kernel_resident,
            out_shape=jax.ShapeDtypeStruct((B_pad, N_pad), out_dtype),
            grid_spec=pltpu.PrefetchScalarGridSpec(
                num_scalar_prefetch=0,
                grid=(B_pad // tb,),
                in_specs=[
                    pl.BlockSpec((tb, K_pad), lambda i: (i, 0)),      # x row tile
                    pl.BlockSpec((K_pad, N_pad), lambda i: (0, 0)),   # whole folded W
                    pl.BlockSpec((1, N_pad), lambda i: (0, 0)),       # whole folded bias
                ],
                out_specs=pl.BlockSpec((tb, N_pad), lambda i: (i, 0)),
            ),
            compiler_params=pltpu.CompilerParams(
                dimension_semantics=("parallel",),
                vmem_limit_bytes=vmem_limit),
        )(xp, wp, bias2d)
    else:
        tn, tk = cfg["tn"], cfg["tk"]
        out = pl.pallas_call(
            _kernel_ktiled,
            out_shape=jax.ShapeDtypeStruct((B_pad, N_pad), out_dtype),
            grid_spec=pltpu.PrefetchScalarGridSpec(
                num_scalar_prefetch=0,
                grid=(B_pad // tb, N_pad // tn, K_pad // tk),
                in_specs=[
                    pl.BlockSpec((tb, tk), lambda bi, ni, ki: (bi, ki)),
                    pl.BlockSpec((tk, tn), lambda bi, ni, ki: (ki, ni)),
                    pl.BlockSpec((1, tn), lambda bi, ni, ki: (0, ni)),
                ],
                out_specs=pl.BlockSpec((tb, tn), lambda bi, ni, ki: (bi, ni)),
                scratch_shapes=[pltpu.VMEM((tb, tn), jnp.float32)],
            ),
            compiler_params=pltpu.CompilerParams(
                dimension_semantics=("parallel", "parallel", "arbitrary"),
                vmem_limit_bytes=vmem_limit),
        )(xp, wp, bias2d)

    return out[:B, :N]


def block_forward(x, w, b, gamma, beta, running_mean, running_var, *,
                  eps=BN_EPS, compute_dtype=jnp.bfloat16, out_dtype=jnp.float32):
    """Convenience: fold + apply in one call (prefer fold_bn_linear once + block_apply)."""
    w_f, b_f = fold_bn_linear(w, b, gamma, beta, running_mean, running_var,
                              eps=eps, compute_dtype=compute_dtype)
    return block_apply(x, w_f, b_f, out_dtype=out_dtype)


# ---------------------------------------------------------------------------
# Reference + test harness
# ---------------------------------------------------------------------------

def reference_forward(x, w, b, gamma, beta, run_mean, run_var, eps=BN_EPS):
    y = x @ w.T + b
    y = (y - run_mean) / jnp.sqrt(run_var + eps) * gamma + beta
    return jnp.maximum(y, 0.0)


def _make_inputs(key, batch, f_in, f_out):
    kx, kw, kb, kg, kbe, km, kv = jax.random.split(key, 7)
    x = jax.random.normal(kx, (batch, f_in), dtype=jnp.float32)
    bound = 1.0 / math.sqrt(f_in)              # nn.Linear default init range
    w = jax.random.uniform(kw, (f_out, f_in), minval=-bound, maxval=bound,
                           dtype=jnp.float32)  # PyTorch (out, in) layout
    b = jax.random.uniform(kb, (f_out,), minval=-bound, maxval=bound, dtype=jnp.float32)
    gamma = 1.0 + 0.1 * jax.random.normal(kg, (f_out,), dtype=jnp.float32)
    beta = 0.1 * jax.random.normal(kbe, (f_out,), dtype=jnp.float32)
    run_mean = 0.1 * jax.random.normal(km, (f_out,), dtype=jnp.float32)
    run_var = 1.0 + 0.1 * jax.random.uniform(kv, (f_out,), dtype=jnp.float32)
    return x, w, b, gamma, beta, run_mean, run_var


if __name__ == "__main__":
    key = jax.random.PRNGKey(0)
    k1, k2 = jax.random.split(key)

    # Case 1: module-consistent small shape (batch=8, in=32, bottleneck=128),
    # f32 compute -> tight numerics check (resident path, single tile).
    a1 = _make_inputs(k1, 8, 32, 128)
    wf1, bf1 = fold_bn_linear(*a1[1:], compute_dtype=jnp.float32)
    out1 = jax.block_until_ready(block_apply(a1[0], wf1, bf1))
    ref1 = reference_forward(*a1)
    assert out1.shape == (8, 128)
    assert jnp.allclose(out1, ref1, atol=1e-4, rtol=1e-4), "case1 mismatch vs reference"

    # Case 2: non-aligned shape (batch=300, in=272, bottleneck=1000 = module default):
    # exercises B/K/N padding, multi-batch-tile resident path, default bf16 compute.
    a2 = _make_inputs(k2, 300, 272, 1000)
    ref2 = reference_forward(*a2)
    wf2, bf2 = fold_bn_linear(*a2[1:])                       # bf16 (default)
    out2 = jax.block_until_ready(block_apply(a2[0], wf2, bf2))
    assert out2.shape == (300, 1000)
    assert jnp.allclose(out2, ref2, atol=5e-2, rtol=5e-2), "case2 (bf16) mismatch"

    # Case 3: same shape, forced K-tiled accumulator path, f32 compute -> tight check.
    wf3, bf3 = fold_bn_linear(*a2[1:], compute_dtype=jnp.float32)
    out3 = jax.block_until_ready(block_apply(a2[0], wf3, bf3, prefer_resident=False))
    assert out3.shape == (300, 1000)
    assert jnp.allclose(out3, ref2, atol=1e-3, rtol=1e-3), "case3 (ktiled) mismatch"

    print("KERNEL_OK")
</pallas_src>

<mosaic_0001>
module attributes {stable_mosaic.version = 11 : i64} {
  func.func @_kernel_resident(%arg0: i32, %arg1: memref<16x128xf32, #tpu.memory_space<vmem>>, %arg2: memref<128x128xf32, #tpu.memory_space<vmem>>, %arg3: memref<1x128xf32, #tpu.memory_space<vmem>>, %arg4: memref<16x128xf32, #tpu.memory_space<vmem>>) attributes {dimension_semantics = [#tpu.dimension_semantics<parallel>], iteration_bounds = array<i64: 1>, scalar_prefetch = 0 : i64, scratch_operands = 0 : i64, tpu.core_type = #tpu.core_type<tc>, window_params = [{transform_indices = @transform_0, window_bounds = array<i64: 16, 128>}, {pipeline_mode = #tpu.pipeline_mode<synchronous>, transform_indices = @transform_1, window_bounds = array<i64: 128, 128>}, {pipeline_mode = #tpu.pipeline_mode<synchronous>, transform_indices = @transform_2, window_bounds = array<i64: 1, 128>}, {transform_indices = @transform_3, window_bounds = array<i64: 16, 128>}]} {
    %c0 = arith.constant 0 : index
    %c0_0 = arith.constant 0 : index
    %0 = vector.load %arg1[%c0, %c0_0] : memref<16x128xf32, #tpu.memory_space<vmem>>, vector<16x128xf32>
    %c0_1 = arith.constant 0 : index
    %c0_2 = arith.constant 0 : index
    %1 = vector.load %arg2[%c0_1, %c0_2] : memref<128x128xf32, #tpu.memory_space<vmem>>, vector<128x128xf32>
    %cst = arith.constant dense<0.000000e+00> : vector<16x128xf32>
    %2 = tpu.matmul %0, %1, %cst {dimension_numbers = #tpu.dot_dimension_numbers<[1], [0], [0], [1], [0, 0, 1, 1], [], []>} : vector<16x128xf32>, vector<128x128xf32>, vector<16x128xf32> -> vector<16x128xf32>
    %c0_3 = arith.constant 0 : index
    %c0_4 = arith.constant 0 : index
    %3 = vector.load %arg3[%c0_3, %c0_4] : memref<1x128xf32, #tpu.memory_space<vmem>>, vector<1x128xf32>
    %4 = vector.broadcast %3 : vector<1x128xf32> to vector<16x128xf32>
    %5 = arith.addf %2, %4 : vector<16x128xf32>
    %cst_5 = arith.constant 0.000000e+00 : f32
    %6 = vector.broadcast %cst_5 : f32 to vector<16x128xf32>
    %7 = arith.maximumf %5, %6 : vector<16x128xf32>
    %c0_6 = arith.constant 0 : index
    %c0_7 = arith.constant 0 : index
    %8 = vector.load %arg4[%c0_6, %c0_7] : memref<16x128xf32, #tpu.memory_space<vmem>>, vector<16x128xf32>
    tpu.vector_store %arg4[%c0_6, %c0_7], %7 {strides = array<i32>} : memref<16x128xf32, #tpu.memory_space<vmem>>, vector<16x128xf32>,
    return
  }
  func.func @transform_0(%arg0: i32) -> (i32, i32) {
    %c0_i32 = arith.constant 0 : i32
    %c0_i32_0 = arith.constant 0 : i32
    return %arg0, %c0_i32 : i32, i32
  }
  func.func @transform_1(%arg0: i32) -> (i32, i32) {
    %c0_i32 = arith.constant 0 : i32
    %c0_i32_0 = arith.constant 0 : i32
    %c0_i32_1 = arith.constant 0 : i32
    return %c0_i32, %c0_i32_0 : i32, i32
  }
  func.func @transform_2(%arg0: i32) -> (i32, i32) {
    %c0_i32 = arith.constant 0 : i32
    %c0_i32_0 = arith.constant 0 : i32
    %c0_i32_1 = arith.constant 0 : i32
    return %c0_i32, %c0_i32_0 : i32, i32
  }
  func.func @transform_3(%arg0: i32) -> (i32, i32) {
    %c0_i32 = arith.constant 0 : i32
    %c0_i32_0 = arith.constant 0 : i32
    return %arg0, %c0_i32 : i32, i32
  }
}

</mosaic_0001>

<bundles_post_ra>
// kernel: tpu_custom_call.1
= control target key start
LH: loop header
LB: loop body
LE: loop exit
PB: predicated region body
PF: predicated region fallthrough
CT: control target
= control target key end

     0   :  { %8 = vsyncpa [#allocation3], 0  ;;  %s262_s0 = inlined_call_operand.hbm [shape: f32[16,128], index: 0, kind: input, shape index: {}]   ;;  %s263_s1 = inlined_call_operand.hbm [shape: f32[128,128], index: 1, kind: input, shape index: {}]   ;;  %s264_s2 = inlined_call_operand.vmem [shape: f32[1,128], index: 2, kind: input, shape index: {}]   ;;  %s265_s3 = inlined_call_operand.hbm [shape: f32[16,128], index: 3, kind: output, shape index: {}]  }
   0x1   :  { %9 = vsyncpa [#allocation6], 0 }
   0x2   :  { %10 = vsyncpa [#allocation4], 0  ;;  %s15_s14 = sshll.u32 %s262_s0, 4  ;;  %s216_s15 = smov [#allocation2]   ;;  %s16_s14 = int_to_ptr.hbm [resolvable:$true] %s15_s14 }
   0x3   :  { %s17_s16 = sshll.u32 %s216_s15, 4  ;;  %s28_s19 = sshll.u32 %s263_s1, 4  ;;  %s18_s16 = int_to_ptr.vmem [resolvable:$true] %s17_s16  ;;  %s29_s19 = int_to_ptr.hbm [resolvable:$true] %s28_s19 }
   0x4   :  { %s217_s20 = smov 128   ;;  %s218_s21 = smov 8  }
   0x5   :  { %23 = dma.hbm_to_vmem [thread:$0]  %s16_s14, 256, %s18_s16, [#allocation3], %s217_s20, %s217_s20, %s218_s21  }
   0x6   :  { %s219_s22 = smov [#allocation5]  }
   0x7   :  { %s30_s23 = sshll.u32 %s219_s22, 4  ;;  %s31_s23 = int_to_ptr.vmem [resolvable:$true] %s30_s23 }
   0x8   :  { %36 = dma.hbm_to_vmem [thread:$0]  %s29_s19, 2048, %s31_s23, [#allocation6], %s217_s20, %s217_s20, %s218_s21  }
   0x9   :  { %210 = dma.done.wait [#allocation3], 256  }
   0xa   :  { %211 = vsyncadd [#allocation3], 4294967040 }
   0xb   :  { %212 = dma.done.wait [#allocation6], 2048  }
   0xc   :  { %213 = vsyncadd [#allocation6], 4294965248  ;;  %v64_v0 = vld [vmem:[#allocation5 + $0x78] sm:$0xff]  ;;  %v63_v1 = vld [vmem:[#allocation5 + $0x70] sm:$0xff]  ;;  %s220_s24 = smov [#allocation7]   ;;  %s102_s28 = sshll.u32 %s265_s3, 4  ;;  %s103_s28 = int_to_ptr.hbm [resolvable:$true] %s102_s28 }
   0xd   :  { %69 = vmatpush.msra.mxu0 %v64_v0  ;;  %116 = vmatpush.msra.mxu1 %v64_v0  ;;  %v62_v2 = vld [vmem:[#allocation5 + $0x68] sm:$0xff]  ;;  %v61_v3 = vld [vmem:[#allocation5 + $0x60] sm:$0xff]  ;;  %v60_v4 = vld [vmem:[#allocation5 + $0x58] sm:$0xff]  ;;  %s100_s25 = sshll.u32 %s220_s24, 4  ;;  %s101_s25 = int_to_ptr.vmem [resolvable:$true] %s100_s25 }
   0xe   :  { %v59_v5 = vld [vmem:[#allocation5 + $0x50] sm:$0xff]  ;;  %v58_v6 = vld [vmem:[#allocation5 + $0x48] sm:$0xff]  ;;  %v57_v7 = vld [vmem:[#allocation5 + $0x40] sm:$0xff] }
   0xf   :  { %70 = vmatpush.msra.mxu0 %v63_v1  ;;  %117 = vmatpush.msra.mxu1 %v63_v1  ;;  %v56_v8 = vld [vmem:[#allocation5 + $0x38] sm:$0xff]  ;;  %v55_v9 = vld [vmem:[#allocation5 + $0x30] sm:$0xff]  ;;  %v54_v10 = vld [vmem:[#allocation5 + $0x28] sm:$0xff] }
  0x10   :  { %v53_v11 = vld [vmem:[#allocation5 + $0x20] sm:$0xff]  ;;  %v52_v12 = vld [vmem:[#allocation5 + $0x18] sm:$0xff]  ;;  %v51_v13 = vld [vmem:[#allocation5 + $0x10] sm:$0xff] }
  0x11   :  { %71 = vmatpush.msra.mxu0 %v62_v2  ;;  %118 = vmatpush.msra.mxu1 %v62_v2  ;;  %v50_v14 = vld [vmem:[#allocation5 + $0x8] sm:$0xff]  ;;  %v49_v15 = vld [vmem:[#allocation5] sm:$0xff]  ;;  %v47_v16 = vld [vmem:[#allocation2] sm:$0xff] }
  0x12   :  { %v48_v17 = vld [vmem:[#allocation2 + $0x8] sm:$0xff]  ;;  %v137_v18 = vld [vmem:[%s264_s2] ss:$0 sm:$0xff] }
  0x13   :  { %72 = vmatpush.msra.mxu0 %v61_v3  ;;  %119 = vmatpush.msra.mxu1 %v61_v3 }
  0x15   :  { %73 = vmatpush.msra.mxu0 %v60_v4  ;;  %120 = vmatpush.msra.mxu1 %v60_v4 }
  0x17   :  { %74 = vmatpush.msra.mxu0 %v59_v5  ;;  %121 = vmatpush.msra.mxu1 %v59_v5 }
  0x19   :  { %75 = vmatpush.msra.mxu0 %v58_v6  ;;  %122 = vmatpush.msra.mxu1 %v58_v6 }
  0x1b   :  { %76 = vmatpush.msra.mxu0 %v57_v7  ;;  %123 = vmatpush.msra.mxu1 %v57_v7 }
  0x1d   :  { %77 = vmatpush.msra.mxu0 %v56_v8  ;;  %124 = vmatpush.msra.mxu1 %v56_v8 }
  0x1f   :  { %78 = vmatpush.msra.mxu0 %v55_v9  ;;  %125 = vmatpush.msra.mxu1 %v55_v9 }
  0x21   :  { %79 = vmatpush.msra.mxu0 %v54_v10  ;;  %126 = vmatpush.msra.mxu1 %v54_v10 }
  0x23   :  { %80 = vmatpush.msra.mxu0 %v53_v11  ;;  %127 = vmatpush.msra.mxu1 %v53_v11 }
  0x25   :  { %81 = vmatpush.msra.mxu0 %v52_v12  ;;  %128 = vmatpush.msra.mxu1 %v52_v12 }
  0x27   :  { %82 = vmatpush.msra.mxu0 %v51_v13  ;;  %129 = vmatpush.msra.mxu1 %v51_v13 }
  0x29   :  { %83 = vmatpush.msra.mxu0 %v50_v14  ;;  %130 = vmatpush.msra.mxu1 %v50_v14 }
  0x2b   :  { %84 = vmatpush.msra.mxu0 %v49_v15  ;;  %131 = vmatpush.msra.mxu1 %v49_v15 }
  0x2c   :  { %85 = vmatmul.f32.vlgmr.msra.gmra.mxu0 %v47_v16  ;;  %88 = vmatmul.f32.vlgmr.msra.gmra.mxu1 %v48_v17 }
  0xa9   :  { %v86_v19 = vpop.f32.mrf.mxu0  ;;  %v89_v20 = vpop.f32.mrf.mxu1 }
  0xaa   :  { %v87_v21 = vadd.f32 %v137_v18, %v86_v19  ;;  %v90_v22 = vadd.f32 %v137_v18, %v89_v20 }
  0xac   :  { %v92_v23 = vmax.f32 %v87_v21, 0.0  ;;  %v93_v24 = vmax.f32 %v90_v22, 0.0 }
  0xae   :  { %94 = vst [vmem:[#allocation7] sm:$0xff] %v92_v23 }
  0xaf   :  { %95 = vst [vmem:[#allocation7 + $0x8] sm:$0xff] %v93_v24 }
  0xb0   :  { %108 = dma.vmem_to_hbm [thread:$0]  %s101_s25, 256, %s103_s28, [#allocation4], %s217_s20, %s217_s20, %s218_s21  }
  0xb1   :  { %214 = dma.done.wait [#allocation4], 256  }
  0xb2   :  { %215 = vsyncadd [#allocation4], 4294967040 }
  0xb3   :  { %113 = vsyncpa [#allocation3], 1 }
  0xb4   :  { %114 = vsyncpa [#allocation6], 1 }
  0xb5   :  { %115 = vsyncpa [#allocation4], 1 }

</bundles_post_ra>
